<compile_context>
chip_gen: v7x
topology: tpu7x:2x2x1
jax: 0.10.0
libtpu: 0.0.40
codegen_flags: <defaults>
</compile_context>

<pallas_src>
import numpy as np
from functools import partial

import jax
import jax.numpy as jnp
from jax.experimental import pallas as pl
from jax.experimental.pallas import tpu as pltpu

GAMMA = 10.0
CENTERS_NP = np.arange(0, 2, 0.1, dtype=np.float32)   # 20 centers (PyTorch default)
K = CENTERS_NP.shape[0]                                # 20
GROUP = 4                                              # bonds folded per kernel row
EMBED_DIM = 32                                         # demo embed dim (4*32 = 128 lanes)


def _bond_length_rbf_kernel(x_ref, c_ref, s_ref, w_ref, b_ref, o_ref):
    # x_ref: (GROUP, T)            transposed packed bond lengths (lane-dense)
    # c_ref: (1, GROUP*K)          sqrt(gamma)-scaled, GROUP-tiled RBF centers
    # s_ref: (GROUP, GROUP*K)      sqrt(gamma)-scaled 0/1 selection matrix
    # w_ref: (GROUP*K, GROUP*E)    block-diagonal linear weight
    # b_ref: (1, GROUP*E)          GROUP-tiled bias
    # o_ref: (T, GROUP*E)          packed output (row-major identical to (GROUP*T, E))
    x = x_ref[...]                                                   # (GROUP, T)
    # Lane-expand (and sqrt(gamma)-scale) x: column group g of x_rep holds
    # sqrt(gamma) * x[g, :] repeated K times.  HIGHEST keeps x at f32 accuracy.
    x_rep = jax.lax.dot_general(
        x, s_ref[...],
        dimension_numbers=(((0,), (0,)), ((), ())),
        preferred_element_type=jnp.float32,
        precision=jax.lax.Precision.HIGHEST)                         # (T, GROUP*K)
    d = x_rep - c_ref[...]
    rbf = jnp.exp(-(d * d))                                          # gamma already folded in
    out = jax.lax.dot_general(
        rbf, w_ref[...],
        dimension_numbers=(((1,), (0,)), ((), ())),
        preferred_element_type=jnp.float32,
        precision=jax.lax.Precision.HIGHEST) + b_ref[...]            # (T, GROUP*E)
    o_ref[...] = out.astype(o_ref.dtype)                             # lane-dense store


def make_params(weight, bias, centers=CENTERS_NP, gamma=GAMMA):
    """Pre-pack the (tiny) resident kernel parameters.  Call once per module.

    weight: (K, E)  == PyTorch linear.weight.T ;  bias: (E,)
    """
    k, e = weight.shape
    centers = jnp.asarray(centers, jnp.float32).reshape(-1)
    assert centers.shape[0] == k, "weight rows must match number of RBF centers"
    sqrt_g = jnp.sqrt(jnp.float32(gamma))
    sel_scaled = jnp.kron(jnp.eye(GROUP, dtype=jnp.float32),
                          jnp.ones((1, k), jnp.float32)) * sqrt_g        # (GROUP, GROUP*K)
    c_scaled = (jnp.tile(centers, GROUP) * sqrt_g).reshape(1, GROUP * k)  # (1, GROUP*K)
    w_bd = jnp.kron(jnp.eye(GROUP, dtype=jnp.float32),
                    weight.astype(jnp.float32))                          # (GROUP*K, GROUP*E)
    b_tiled = jnp.tile(bias.astype(jnp.float32), GROUP).reshape(1, GROUP * e)
    return sel_scaled, c_scaled, w_bd, b_tiled


@partial(jax.jit, static_argnames=("tile_rows", "out_dtype"))
def bond_length_rbf(bond_length, sel_scaled, c_scaled, w_bd, b_tiled, *,
                    tile_rows=4096, out_dtype=jnp.float32):
    """bond_length: any shape.  Returns (N, E) with N = bond_length.size.

    tile_rows = packed rows per grid step (each packed row = GROUP bonds).
    out_dtype = jnp.bfloat16 halves the dominant output-store traffic if the
    consumer tolerates it (default float32 matches the PyTorch module).
    """
    gk = sel_scaled.shape[1]                      # GROUP*K
    ge = w_bd.shape[1]                            # GROUP*E
    e = ge // GROUP

    x = jnp.reshape(bond_length, (-1,)).astype(jnp.float32)
    n = x.shape[0]

    # Minimal padding: only to a multiple of GROUP (<= GROUP-1 extra bonds).
    pad = (-n) % GROUP
    if pad:
        x = jnp.pad(x, (0, pad))
    n_pack = (n + pad) // GROUP

    # Transposed packing: x_t[g, r] = bond r*GROUP + g  -> lane-dense x load.
    x_t = x.reshape(n_pack, GROUP).T              # (GROUP, n_pack)

    # Row tile: full extent for small inputs, otherwise a (8,128)-aligned tile.
    if n_pack <= tile_rows:
        row_tile = n_pack
    else:
        row_tile = max(128, (tile_rows // 128) * 128)
    grid = (pl.cdiv(n_pack, row_tile),)           # ragged last block handled by Pallas

    out_packed = pl.pallas_call(
        _bond_length_rbf_kernel,
        out_shape=jax.ShapeDtypeStruct((n_pack, ge), out_dtype),
        grid_spec=pltpu.PrefetchScalarGridSpec(
            num_scalar_prefetch=0,
            grid=grid,
            in_specs=[
                pl.BlockSpec((GROUP, row_tile), lambda i: (0, i)),   # x tile (transposed)
                pl.BlockSpec((1, gk), lambda i: (0, 0)),             # centers (resident)
                pl.BlockSpec((GROUP, gk), lambda i: (0, 0)),         # selection (resident)
                pl.BlockSpec((gk, ge), lambda i: (0, 0)),            # block-diag weight
                pl.BlockSpec((1, ge), lambda i: (0, 0)),             # tiled bias
            ],
            out_specs=pl.BlockSpec((row_tile, ge), lambda i: (i, 0)),
        ),
        compiler_params=pltpu.CompilerParams(
            dimension_semantics=("parallel",)),
        # TODO(synk): on v7x, verify the single "parallel" axis is split across
        # both TensorCores; otherwise add an explicit leading core axis.
    )(x_t, c_scaled, sel_scaled, w_bd, b_tiled)

    # (rows, GROUP*E) row-major == (rows*GROUP, E) row-major.
    out = out_packed.reshape(n_pack * GROUP, e)
    if pad:                                       # only copies when N % GROUP != 0
        out = out[:n]
    return out


def _reference_np(bond_length, weight, bias):
    x = np.asarray(bond_length, np.float64).reshape(-1, 1)
    c = CENTERS_NP.astype(np.float64).reshape(1, -1)
    rbf = np.exp(-GAMMA * np.square(x - c))
    return rbf @ np.asarray(weight, np.float64) + np.asarray(bias, np.float64)


if __name__ == "__main__":
    key = jax.random.PRNGKey(0)
    k1, k2, k3 = jax.random.split(key, 3)

    # nn.Linear(20, EMBED_DIM) equivalent; weight stored transposed as (K, E).
    weight = jax.random.normal(k1, (K, EMBED_DIM), dtype=jnp.float32) * 0.1
    bias = jax.random.normal(k2, (EMBED_DIM,), dtype=jnp.float32) * 0.01
    params = make_params(weight, bias)            # hoisted out of the per-call path

    # Small bond-length input: 16 bonds in [0, 2).
    bond_length = jax.random.uniform(k3, (16,), minval=0.0, maxval=2.0,
                                     dtype=jnp.float32)
    out = jax.block_until_ready(bond_length_rbf(bond_length, *params))
    ref = _reference_np(bond_length, weight, bias)
    assert out.shape == (16, EMBED_DIM)
    assert np.allclose(np.asarray(out), ref, atol=2e-5, rtol=2e-5)

    # Ragged N (not a multiple of GROUP) exercises the pad + [:n] path.
    bond_length2 = jax.random.uniform(jax.random.PRNGKey(1), (50,),
                                      minval=0.0, maxval=2.0, dtype=jnp.float32)
    out2 = jax.block_until_ready(bond_length_rbf(bond_length2, *params))
    ref2 = _reference_np(bond_length2, weight, bias)
    assert out2.shape == (50, EMBED_DIM)
    assert np.allclose(np.asarray(out2), ref2, atol=2e-5, rtol=2e-5)

    print("KERNEL_OK")
</pallas_src>

<mosaic_0001>
module attributes {stable_mosaic.version = 11 : i64} {
  func.func @_bond_length_rbf_kernel(%arg0: i32, %arg1: memref<4x4xf32, #tpu.memory_space<vmem>>, %arg2: memref<1x80xf32, #tpu.memory_space<vmem>>, %arg3: memref<4x80xf32, #tpu.memory_space<vmem>>, %arg4: memref<80x128xf32, #tpu.memory_space<vmem>>, %arg5: memref<1x128xf32, #tpu.memory_space<vmem>>, %arg6: memref<4x128xf32, #tpu.memory_space<vmem>>) attributes {dimension_semantics = [#tpu.dimension_semantics<parallel>], iteration_bounds = array<i64: 1>, scalar_prefetch = 0 : i64, scratch_operands = 0 : i64, tpu.core_type = #tpu.core_type<tc>, window_params = [{transform_indices = @transform_0, window_bounds = array<i64: 4, 4>}, {pipeline_mode = #tpu.pipeline_mode<synchronous>, transform_indices = @transform_1, window_bounds = array<i64: 1, 80>}, {pipeline_mode = #tpu.pipeline_mode<synchronous>, transform_indices = @transform_2, window_bounds = array<i64: 4, 80>}, {pipeline_mode = #tpu.pipeline_mode<synchronous>, transform_indices = @transform_3, window_bounds = array<i64: 80, 128>}, {pipeline_mode = #tpu.pipeline_mode<synchronous>, transform_indices = @transform_4, window_bounds = array<i64: 1, 128>}, {transform_indices = @transform_5, window_bounds = array<i64: 4, 128>}]} {
    %c0 = arith.constant 0 : index
    %c0_0 = arith.constant 0 : index
    %0 = vector.load %arg1[%c0, %c0_0] : memref<4x4xf32, #tpu.memory_space<vmem>>, vector<4x4xf32>
    %c0_1 = arith.constant 0 : index
    %c0_2 = arith.constant 0 : index
    %1 = vector.load %arg3[%c0_1, %c0_2] : memref<4x80xf32, #tpu.memory_space<vmem>>, vector<4x80xf32>
    %cst = arith.constant dense<0.000000e+00> : vector<4x80xf32>
    %2 = tpu.matmul %0, %1, %cst {dimension_numbers = #tpu.dot_dimension_numbers<[0], [0], [1], [1], [0, 1, 1, 1], [], []>, precision = #tpu.contract_precision<fp32>} : vector<4x4xf32>, vector<4x80xf32>, vector<4x80xf32> -> vector<4x80xf32>
    %c0_3 = arith.constant 0 : index
    %c0_4 = arith.constant 0 : index
    %3 = vector.load %arg2[%c0_3, %c0_4] : memref<1x80xf32, #tpu.memory_space<vmem>>, vector<1x80xf32>
    %4 = vector.broadcast %3 : vector<1x80xf32> to vector<4x80xf32>
    %5 = arith.subf %2, %4 : vector<4x80xf32>
    %6 = arith.mulf %5, %5 : vector<4x80xf32>
    %cst_5 = arith.constant 0.000000e+00 : f32
    %7 = vector.broadcast %cst_5 : f32 to vector<4x80xf32>
    %8 = arith.subf %7, %6 : vector<4x80xf32>
    %9 = math.exp %8 : vector<4x80xf32>
    %c0_6 = arith.constant 0 : index
    %c0_7 = arith.constant 0 : index
    %10 = vector.load %arg4[%c0_6, %c0_7] : memref<80x128xf32, #tpu.memory_space<vmem>>, vector<80x128xf32>
    %cst_8 = arith.constant dense<0.000000e+00> : vector<4x128xf32>
    %11 = tpu.matmul %9, %10, %cst_8 {dimension_numbers = #tpu.dot_dimension_numbers<[1], [0], [0], [1], [0, 0, 1, 1], [], []>, precision = #tpu.contract_precision<fp32>} : vector<4x80xf32>, vector<80x128xf32>, vector<4x128xf32> -> vector<4x128xf32>
    %c0_9 = arith.constant 0 : index
    %c0_10 = arith.constant 0 : index
    %12 = vector.load %arg5[%c0_9, %c0_10] : memref<1x128xf32, #tpu.memory_space<vmem>>, vector<1x128xf32>
    %13 = vector.broadcast %12 : vector<1x128xf32> to vector<4x128xf32>
    %14 = arith.addf %11, %13 : vector<4x128xf32>
    %c0_11 = arith.constant 0 : index
    %c0_12 = arith.constant 0 : index
    %15 = vector.load %arg6[%c0_11, %c0_12] : memref<4x128xf32, #tpu.memory_space<vmem>>, vector<4x128xf32>
    tpu.vector_store %arg6[%c0_11, %c0_12], %14 {strides = array<i32>} : memref<4x128xf32, #tpu.memory_space<vmem>>, vector<4x128xf32>,
    return
  }
  func.func @transform_0(%arg0: i32) -> (i32, i32) {
    %c0_i32 = arith.constant 0 : i32
    %c0_i32_0 = arith.constant 0 : i32
    return %c0_i32, %arg0 : i32, i32
  }
  func.func @transform_1(%arg0: i32) -> (i32, i32) {
    %c0_i32 = arith.constant 0 : i32
    %c0_i32_0 = arith.constant 0 : i32
    %c0_i32_1 = arith.constant 0 : i32
    return %c0_i32, %c0_i32_0 : i32, i32
  }
  func.func @transform_2(%arg0: i32) -> (i32, i32) {
    %c0_i32 = arith.constant 0 : i32
    %c0_i32_0 = arith.constant 0 : i32
    %c0_i32_1 = arith.constant 0 : i32
    return %c0_i32, %c0_i32_0 : i32, i32
  }
  func.func @transform_3(%arg0: i32) -> (i32, i32) {
    %c0_i32 = arith.constant 0 : i32
    %c0_i32_0 = arith.constant 0 : i32
    %c0_i32_1 = arith.constant 0 : i32
    return %c0_i32, %c0_i32_0 : i32, i32
  }
  func.func @transform_4(%arg0: i32) -> (i32, i32) {
    %c0_i32 = arith.constant 0 : i32
    %c0_i32_0 = arith.constant 0 : i32
    %c0_i32_1 = arith.constant 0 : i32
    return %c0_i32, %c0_i32_0 : i32, i32
  }
  func.func @transform_5(%arg0: i32) -> (i32, i32) {
    %c0_i32 = arith.constant 0 : i32
    %c0_i32_0 = arith.constant 0 : i32
    return %arg0, %c0_i32 : i32, i32
  }
}

</mosaic_0001>

<bundles_post_ra>
// kernel: bond_length_rbf.1
= control target key start
LH: loop header
LB: loop body
LE: loop exit
PB: predicated region body
PF: predicated region fallthrough
CT: control target
= control target key end

     0   :  { %10 = vsyncpa [#allocation3], 0  ;;  %s1514_s18 = smov [#allocation2]   ;;  %s1692_s0 = inlined_call_operand.vmem [shape: f32[4,4], index: 0, kind: input, shape index: {}]   ;;  %s1693_s1 = inlined_call_operand.vmem [shape: f32[1,80], index: 1, kind: input, shape index: {}]   ;;  %s1694_s2 = inlined_call_operand.vmem [shape: f32[4,80], index: 2, kind: input, shape index: {}]   ;;  %s1695_s3 = inlined_call_operand.hbm [shape: f32[80,128], index: 3, kind: input, shape index: {}]   ;;  %s1696_s4 = inlined_call_operand.vmem [shape: f32[1,128], index: 4, kind: input, shape index: {}]   ;;  %s1697_s5 = inlined_call_operand.vmem [shape: f32[4,128], index: 5, kind: output, shape index: {}]  }
   0x1   :  { %s22_s19 = sshll.u32 %s1514_s18, 4  ;;  %s1490_s22 = scalar_lea.hbm %s1695_s3, 1280  ;;  %s23_s19 = int_to_ptr.vmem [resolvable:$true] %s22_s19 }
   0x2   :  { %p1491_p0 = scmp.ne.s32.totalorder %s1695_s3, %s1490_s22  ;;  %p1494_p1 = scmp.lt.u32.totalorder %s1490_s22, %s1695_s3 }
   0x4   :  { %p1496_p2 = pnand %p1494_p1, %p1491_p0 }
   0x6   :  { %1499 = shalt.err (!%p1496_p2)
}
   0x7   :  { %s1500_s27 = scalar_lea.vmem %s23_s19, 1280  ;;  %p1505_p4 = scmp.lt.s32.totalorder %s23_s19, %s23_s19 }
   0x8   :  { %p1501_p3 = scmp.ne.s32.totalorder %s23_s19, %s1500_s27  ;;  %p1506_p5 = scmp.lt.s32.totalorder %s1500_s27, %s1500_s27 }
   0xa   :  { %p1507_p6 = por %p1506_p5, %p1505_p4 }
   0xc   :  { %p1508_p7 = pnand %p1507_p6, %p1501_p3 }
   0xe   :  { %1511 = shalt.err (!%p1508_p7)
}
   0xf   :  { %s1515_s28 = smov 128   ;;  %s1516_s29 = smov 8  }
  0x10   :  { %28 = dma.hbm_to_vmem [thread:$0]  %s1695_s3, 1280, %s23_s19, [#allocation3], %s1515_s28, %s1515_s28, %s1516_s29  }
  0x11   :  { %1512 = dma.done.wait [#allocation3], 1280  }
  0x12   :  { %1513 = vsyncadd [#allocation3], 4294966016  ;;  %v34_v0 = vld [vmem:[%s1692_s0] sm:$0xf]  ;;  %vm72_vm0 = vcmask 1043456   ;;  %v1517_v2 = vmov 0.0  }
  0x13   :  { %36 = vxpose.xlu0.b32.start.end [1/1] (short) (narrow) %v34_v0, 8  ;;  %v35_v1 = vld [vmem:[%s1694_s2] sm:$0xf]  ;;  %1204 = vmatprep.subr.mxu0 %v1517_v2  ;;  %vm1518_vm1 = vmmov 0   ;;  %vm68_vm2 = vcmask 31744   ;;  %v535_v17 = vld [vmem:[#allocation2 + $0x8] sm:$0xff] }
  0x14   :  { %v74_v3 = vsel %vm72_vm0, %v35_v1, 0  ;;  %1206 = vmatprep.mubr.msk.f32.mxu0 %vm1518_vm1, %v1517_v2  ;;  %1300 = vmatprep.mubr.msk.f32.mxu1 %vm1518_vm1, %v1517_v2  ;;  %v534_v16 = vld [vmem:[#allocation2] sm:$0xff]  ;;  %v559_v19 = vand.u32 4294901760, %v535_v17  ;;  %v536_v22 = vld [vmem:[#allocation2 + $0x10] sm:$0xff]  ;;  %v537_v23 = vld [vmem:[#allocation2 + $0x18] sm:$0xff]  ;;  %v1519_v27 = vmov 0.0|0.0  }
  0x15   :  { %v77_v4 = vand.u32 4294901760, %v74_v3  ;;  %v556_v18 = vand.u32 4294901760, %v534_v16  ;;  %v562_v25 = vand.u32 4294901760, %v536_v22  ;;  %v565_v26 = vand.u32 4294901760, %v537_v23  ;;  %1402 = vmatprep.subr.bf16.mxu1 %v1519_v27  ;;  %v538_v30 = vld [vmem:[#allocation2 + $0x20] sm:$0xff]  ;;  %v539_v31 = vld [vmem:[#allocation2 + $0x28] sm:$0xff] }
  0x16   :  { %v1592_v21 = vsub.f32 %v535_v17, %v559_v19  ;;  %v568_v33 = vand.u32 4294901760, %v538_v30  ;;  %v571_v34 = vand.u32 4294901760, %v539_v31  ;;  %v540_v37 = vld [vmem:[#allocation2 + $0x30] sm:$0xff]  ;;  %v541_v38 = vld [vmem:[#allocation2 + $0x38] sm:$0xff]  ;;  %v542_v39 = vld [vmem:[#allocation2 + $0x40] sm:$0xff]  ;;  %vm551_vm3 = vcmask 654336  }
  0x17   :  { %1205 = vmatpush3.msra.mxu0 %v77_v4  ;;  %v154_v5 = vsub.f32 %v74_v3, %v77_v4  ;;  %v1590_v20 = vsub.f32 %v534_v16, %v556_v18  ;;  %v1598_v28 = vsub.f32 %v536_v22, %v562_v25  ;;  %v1600_v29 = vsub.f32 %v537_v23, %v565_v26  ;;  %v543_v43 = vld [vmem:[#allocation2 + $0x48] sm:$0xff] }
  0x18   :  { %1209 = vmatprep.subr.mxu0 %v1517_v2  ;;  %v1605_v35 = vpack.c.bf16 %v559_v19, %v556_v18  ;;  %v1607_v36 = vsub.f32 %v538_v30, %v568_v33  ;;  %v1610_v40 = vsub.f32 %v539_v31, %v571_v34  ;;  %v574_v41 = vand.u32 4294901760, %v540_v37 }
  0x19   :  { %v155_v8 = vand.u32 4294901760, %v154_v5  ;;  %v1403_v24 = vpack.c.bf16 %v1592_v21, %v1590_v20  ;;  %v1406_v32 = vpack.c.bf16 %v1600_v29, %v1598_v28  ;;  %v577_v42 = vand.u32 4294901760, %v541_v38 }
  0x1a   :  { %v1613_v44 = vpack.c.bf16 %v565_v26, %v562_v25  ;;  %v580_v45 = vand.u32 4294901760, %v542_v39  ;;  %v583_v46 = vand.u32 4294901760, %v543_v43  ;;  %v1409_v47 = vpack.c.bf16 %v1610_v40, %v1607_v36 }
  0x1b   :  { %v156_v11 = vsub.f32 %v154_v5, %v155_v8  ;;  %1404 = vmatpush3.bf16.msra.mxu1 %v1403_v24  ;;  %v684_v48 = vsub.f32 %v540_v37, %v574_v41  ;;  %v691_v49 = vsub.f32 %v541_v38, %v577_v42  ;;  %v1620_v53 = vpack.c.bf16 %v571_v34, %v568_v33 }
  0x1c   :  { %1405 = vmatprep.subr.bf16.mxu1 %v1519_v27  ;;  %v698_v51 = vsub.f32 %v542_v39, %v580_v45  ;;  %v705_v52 = vsub.f32 %v543_v43, %v583_v46  ;;  %v1625_v55 = vpack.c.bf16 %v577_v42, %v574_v41  ;;  %v643_v56 = vand.u32 4294901760, %v1590_v20 }
  0x1d   :  { %v157_v14 = vand.u32 4294901760, %v156_v11  ;;  %v1412_v50 = vpack.c.bf16 %v691_v49, %v684_v48  ;;  %v650_v57 = vand.u32 4294901760, %v1592_v21  ;;  %v1633_v58 = vpack.c.bf16 %v583_v46, %v580_v45 }
  0x1e   :  { %v1415_v54 = vpack.c.bf16 %v705_v52, %v698_v51  ;;  %v644_v59 = vsub.f32 %v1590_v20, %v643_v56  ;;  %v657_v63 = vand.u32 4294901760, %v1598_v28  ;;  %v664_v0 = vand.u32 4294901760, %v1600_v29 }
  0x1f   :  { %1407 = vmatpush3.bf16.msra.mxu1 %v1406_v32  ;;  %v651_v60 = vsub.f32 %v1592_v21, %v650_v57  ;;  %v699_v21 = vand.u32 4294901760, %v698_v51  ;;  %v706_v22 = vand.u32 4294901760, %v705_v52  ;;  %v1433_v26 = vpack.c.bf16 %v650_v57, %v643_v56 }
  0x20   :  { %1408 = vmatprep.subr.bf16.mxu1 %v1519_v27  ;;  %v645_v61 = vand.u32 4294901760, %v644_v59  ;;  %v658_v3 = vsub.f32 %v1598_v28, %v657_v63  ;;  %v1436_v31 = vpack.c.bf16 %v664_v0, %v657_v63 }
  0x21   :  { %v652_v62 = vand.u32 4294901760, %v651_v60  ;;  %v700_v24 = vsub.f32 %v698_v51, %v699_v21  ;;  %v707_v25 = vsub.f32 %v705_v52, %v706_v22  ;;  %v1445_v34 = vpack.c.bf16 %v706_v22, %v699_v21 }
  0x23   :  { %1410 = vmatpush3.bf16.msra.mxu1 %v1409_v47  ;;  %v1388_v1 = vpack.c.bf16 %v652_v62, %v645_v61  ;;  %v701_v28 = vand.u32 4294901760, %v700_v24 }
  0x24   :  { %1411 = vmatprep.subr.bf16.mxu1 %v1519_v27 }
  0x27   :  { %1413 = vmatpush3.bf16.msra.mxu1 %v1412_v50 }
  0x28   :  { %1414 = vmatprep.subr.bf16.mxu1 %v1519_v27 }
  0x2b   :  { %1416 = vmatpush3.bf16.msra.mxu1 %v1415_v54 }
  0x2c   :  { %1417 = vmatprep.subr.bf16.mxu1 %v1519_v27 }
  0x93   :  { %v52_v6 = vpop.trf.xlu0 }
  0x94   :  { %v70_v7 = vsel %vm68_vm2, %v52_v6, 0 }
  0x95   :  { %v142_v9 = vand.u32 4294901760, %v70_v7 }
  0x97   :  { %v143_v10 = vsub.f32 %v70_v7, %v142_v9  ;;  %v671_v7 = vand.u32 4294901760, %v1607_v36 }
  0x99   :  { %v144_v12 = vand.u32 4294901760, %v143_v10 }
  0x9b   :  { %v145_v13 = vsub.f32 %v143_v10, %v144_v12 }
  0x9d   :  { %v146_v15 = vand.u32 4294901760, %v145_v13 }
  0x9f   :  { %1207 = vmatmul.mubr.f32.vlgmr.msra.gmra.mrb[0].mxu0 %v146_v15  ;;  %v692_v15 = vand.u32 4294901760, %v691_v49 }
  0xa0   :  { %1210 = vmatpush3.msra.mxu0 %v157_v14  ;;  %1211 = vmatprep.mubr.msk.f32.mxu0 %vm1518_vm1, %v1517_v2  ;;  %v685_v14 = vand.u32 4294901760, %v684_v48 }
  0xa1   :  { %1214 = vmatprep.subr.mxu0 %v1517_v2  ;;  %v693_v18 = vsub.f32 %v691_v49, %v692_v15 }
  0xa2   :  { %v686_v17 = vsub.f32 %v684_v48, %v685_v14  ;;  %v1442_v33 = vpack.c.bf16 %v692_v15, %v685_v14 }
  0xa3   :  { %v694_v20 = vand.u32 4294901760, %v693_v18 }
  0xa4   :  { %v687_v19 = vand.u32 4294901760, %v686_v17 }
  0xa6   :  { %v1397_v23 = vpack.c.bf16 %v694_v20, %v687_v19 }
  0xa7   :  { %1212 = vmatmul.mubr.f32.vlgmr.msra.gmra.mrb[0].mxu0 %v142_v9 }
  0xa8   :  { %1215 = vmatpush3.msra.mxu0 %v154_v5  ;;  %1216 = vmatprep.mubr.msk.f32.mxu0 %vm1518_vm1, %v1517_v2  ;;  %v659_v5 = vand.u32 4294901760, %v658_v3 }
  0xa9   :  { %1219 = vmatprep.subr.mxu0 %v1517_v2 }
  0xaf   :  { %1217 = vmatmul.mubr.f32.vlgmr.msra.gmra.mrb[0].mxu0 %v143_v10  ;;  %v672_v10 = vsub.f32 %v1607_v36, %v671_v7  ;;  %v1124_v36 = vld [vmem:[%s1693_s1] ss:$0 sm:$0xff] }
  0xb0   :  { %1220 = vmatpush3.msra.mxu0 %v77_v4  ;;  %1221 = vmatprep.mubr.msk.f32.mxu0 %vm1518_vm1, %v1517_v2 }
  0xb1   :  { %1224 = vmatprep.subr.mxu0 %v1517_v2 }
  0xb7   :  { %1222 = vmatmul.mubr.f32.vlgmr.msra.gmra.mrb[0].mxu0 %v144_v12  ;;  %v673_v12 = vand.u32 4294901760, %v672_v10 }
  0xb8   :  { %1225 = vmatpush3.msra.mxu0 %v155_v8  ;;  %1226 = vmatprep.mubr.msk.f32.mxu0 %vm1518_vm1, %v1517_v2  ;;  %v678_v8 = vand.u32 4294901760, %v1610_v40 }
  0xb9   :  { %1229 = vmatprep.subr.mxu0 %v1517_v2 }
  0xba   :  { %v679_v11 = vsub.f32 %v1610_v40, %v678_v8  ;;  %v1439_v32 = vpack.c.bf16 %v678_v8, %v671_v7 }
  0xbc   :  { %v680_v13 = vand.u32 4294901760, %v679_v11 }
  0xbe   :  { %v1394_v16 = vpack.c.bf16 %v680_v13, %v673_v12 }
  0xbf   :  { %1227 = vmatmul.mubr.f32.vlgmr.msra.gmra.mrb[0].mxu0 %v142_v9 }
  0xc0   :  { %1230 = vmatpush3.msra.mxu0 %v77_v4  ;;  %1231 = vmatprep.mubr.msk.f32.mxu0 %vm1518_vm1, %v1517_v2  ;;  %v665_v4 = vsub.f32 %v1600_v29, %v664_v0  ;;  %v708_v29 = vand.u32 4294901760, %v707_v25 }
  0xc1   :  { %1372 = vmatprep.subr.bf16.mxu0 %v1519_v27 }
  0xc2   :  { %v666_v6 = vand.u32 4294901760, %v665_v4  ;;  %v1400_v30 = vpack.c.bf16 %v708_v29, %v701_v28 }
  0xc7   :  { %1232 = vmatmul.mubr.f32.vlgmr.msra.gmra.mrb[0].mxu0 %v142_v9  ;;  %v1391_v9 = vpack.c.bf16 %v666_v6, %v659_v5 }
  0xc8   :  { %1254 = vmatprep.mubr.msk.f32.mxu0 %vm1518_vm1, %v1517_v2  ;;  %1374 = vmatpush3.bf16.msra.mxu0 %v1605_v35 }
  0xc9   :  { %1375 = vmatprep.subr.bf16.mxu0 %v1519_v27 }
  0xcc   :  { %1377 = vmatpush3.bf16.msra.mxu0 %v1613_v44 }
  0xcd   :  { %1378 = vmatprep.subr.bf16.mxu0 %v1519_v27 }
  0xd0   :  { %1380 = vmatpush3.bf16.msra.mxu0 %v1620_v53 }
  0xd1   :  { %1381 = vmatprep.subr.bf16.mxu0 %v1519_v27 }
  0xd4   :  { %1383 = vmatpush3.bf16.msra.mxu0 %v1625_v55 }
  0xd5   :  { %1384 = vmatprep.subr.bf16.mxu0 %v1519_v27 }
  0xd8   :  { %1386 = vmatpush3.bf16.msra.mxu0 %v1633_v58 }
  0xd9   :  { %1387 = vmatprep.subr.bf16.mxu0 %v1519_v27 }
 0x19a   :  { %v518_v37 = vpop.f32.mrb[0].mxu0 }
 0x19b   :  { %v529_v38 = vsub.f32 %v518_v37, %v1124_v36  ;;  %v1233_v39 = vpop.f32.mrb[1].mxu0 }
 0x19d   :  { %v530_v40 = vmul.f32 %v529_v38, %v529_v38 }
 0x19f   :  { %v531_v41 = vsub.f32 0.0, %v530_v40 }
 0x1a1   :  { %v532_v42 = vmul.f32 1.442695, %v531_v41 }
 0x1a3   :  { %1488 = vpow2.f32 %v532_v42 }
 0x1ad   :  { %v1489_v43 = vpop.eup %1488 }
 0x1ae   :  { %v553_v45 = vsel %vm551_vm3, %v1489_v43, 0 }
 0x1af   :  { %v630_v46 = vand.u32 4294901760, %v553_v45 }
 0x1b1   :  { %v631_v47 = vsub.f32 %v553_v45, %v630_v46 }
 0x1b3   :  { %v632_v48 = vand.u32 4294901760, %v631_v47  ;;  %1301 = vmatmul.mubr.f32.vlgmr.msra.gmra.mrb[0].mxu1 %v631_v47 }
 0x1b4   :  { %1419 = vmatpush3.bf16.msra.mxu1 %v1605_v35  ;;  %1323 = vmatprep.mubr.msk.f32.mxu1 %vm1518_vm1, %v1517_v2 }
 0x1b5   :  { %1420 = vmatprep.subr.bf16.mxu1 %v1519_v27  ;;  %v633_v49 = vsub.f32 %v631_v47, %v632_v48 }
 0x1b7   :  { %v634_v50 = vand.u32 4294901760, %v633_v49 }
 0x1b8   :  { %1422 = vmatpush3.bf16.msra.mxu1 %v1613_v44 }
 0x1b9   :  { %1255 = vmatmul.mubr.f32.vlgmr.msra.gmra.mrb[2].mxu0 %v634_v50  ;;  %1423 = vmatprep.subr.bf16.mxu1 %v1519_v27 }
 0x1ba   :  { %1389 = vmatpush3.bf16.msra.mxu0 %v1388_v1  ;;  %1277 = vmatprep.mubr.msk.f32.mxu0 %vm1518_vm1, %v1517_v2 }
 0x1bb   :  { %1390 = vmatprep.subr.bf16.mxu0 %v1519_v27 }
 0x1bc   :  { %1425 = vmatpush3.bf16.msra.mxu1 %v1620_v53 }
 0x1bd   :  { %1426 = vmatprep.subr.bf16.mxu1 %v1519_v27 }
 0x1be   :  { %1392 = vmatpush3.bf16.msra.mxu0 %v1391_v9 }
 0x1bf   :  { %1393 = vmatprep.subr.bf16.mxu0 %v1519_v27 }
 0x1c0   :  { %1428 = vmatpush3.bf16.msra.mxu1 %v1625_v55 }
 0x1c1   :  { %1429 = vmatprep.subr.bf16.mxu1 %v1519_v27 }
 0x1c2   :  { %1395 = vmatpush3.bf16.msra.mxu0 %v1394_v16 }
 0x1c3   :  { %1396 = vmatprep.subr.bf16.mxu0 %v1519_v27 }
 0x1c4   :  { %1431 = vmatpush3.bf16.msra.mxu1 %v1633_v58 }
 0x1c5   :  { %1432 = vmatprep.subr.bf16.mxu1 %v1519_v27 }
 0x1c6   :  { %1398 = vmatpush3.bf16.msra.mxu0 %v1397_v23 }
 0x1c7   :  { %1324 = vmatmul.mubr.f32.vlgmr.msra.gmra.mrb[0].mxu1 %v632_v48  ;;  %1399 = vmatprep.subr.bf16.mxu0 %v1519_v27 }
 0x1c8   :  { %1434 = vmatpush3.bf16.msra.mxu1 %v1433_v26  ;;  %1346 = vmatprep.mubr.msk.f32.mxu1 %vm1518_vm1, %v1517_v2 }
 0x1c9   :  { %1435 = vmatprep.subr.bf16.mxu1 %v1519_v27 }
 0x1ca   :  { %1401 = vmatpush3.bf16.msra.mxu0 %v1400_v30 }
 0x1cc   :  { %1437 = vmatpush3.bf16.msra.mxu1 %v1436_v31 }
 0x1cd   :  { %1278 = vmatmul.mubr.f32.vlgmr.msra.gmra.mrb[2].mxu0 %v630_v46  ;;  %1438 = vmatprep.subr.bf16.mxu1 %v1519_v27 }
 0x1d0   :  { %1440 = vmatpush3.bf16.msra.mxu1 %v1439_v32 }
 0x1d1   :  { %1441 = vmatprep.subr.bf16.mxu1 %v1519_v27 }
 0x1d4   :  { %1443 = vmatpush3.bf16.msra.mxu1 %v1442_v33 }
 0x1d5   :  { %1444 = vmatprep.subr.bf16.mxu1 %v1519_v27 }
 0x1d8   :  { %1446 = vmatpush3.bf16.msra.mxu1 %v1445_v34 }
 0x1d9   :  { %1447 = vmatprep.subr.bf16.mxu1 %v1519_v27 }
 0x1db   :  { %1347 = vmatmul.mubr.f32.vlgmr.msra.gmra.mrb[0].mxu1 %v630_v46 }
 0x1dc   :  { %1449 = vmatpush3.bf16.msra.mxu1 %v1605_v35  ;;  %1369 = vmatprep.mubr.msk.f32.mxu1 %vm1518_vm1, %v1517_v2  ;;  %v1125_v2 = vld [vmem:[%s1696_s4] ss:$0 sm:$0xff] }
 0x1dd   :  { %1450 = vmatprep.subr.bf16.mxu1 %v1519_v27 }
 0x1e0   :  { %1452 = vmatpush3.bf16.msra.mxu1 %v1613_v44 }
 0x1e1   :  { %1453 = vmatprep.subr.bf16.mxu1 %v1519_v27 }
 0x1e4   :  { %1455 = vmatpush3.bf16.msra.mxu1 %v1620_v53 }
 0x1e5   :  { %1456 = vmatprep.subr.bf16.mxu1 %v1519_v27 }
 0x1e8   :  { %1458 = vmatpush3.bf16.msra.mxu1 %v1625_v55 }
 0x1e9   :  { %1459 = vmatprep.subr.bf16.mxu1 %v1519_v27 }
 0x1ec   :  { %1461 = vmatpush3.bf16.msra.mxu1 %v1633_v58 }
 0x1ef   :  { %1370 = vmatmul.mubr.f32.vlgmr.msra.gmra.mrb[0].mxu1 %v630_v46 }
 0x2a0   :  { %v757_v35 = vpop.f32.mrb[2].mxu0 }
 0x2a1   :  { %v1279_v51 = vpop.f32.mrb[3].mxu0  ;;  %v1462_v44 = vadd.f32 %v1125_v2, %v757_v35 }
 0x2c2   :  { %v1114_v52 = vpop.f32.mrb[0].mxu1 }
 0x2c3   :  { %v1463_v54 = vadd.f32 %v1462_v44, %v1114_v52  ;;  %v1371_v56 = vpop.f32.mrb[1].mxu1 }
 0x2c5   :  { %1118 = vst [vmem:[%s1697_s5] sm:$0xf] %v1463_v54 }
 0x2c6   :  { %1123 = vsyncpa [#allocation3], 1 }

</bundles_post_ra>
